<compile_context>
chip_gen: v7x
topology: tpu7x:2x2x1
jax: 0.10.0
libtpu: 0.0.40
codegen_flags: <defaults>
</compile_context>

<pallas_src>
import math
import jax
import jax.numpy as jnp
from jax.experimental import pallas as pl
from jax.experimental.pallas import tpu as pltpu

# Model hyper-parameters (small, consistent with the module's __init__ args).
D_MODEL = 32
D_INNER = 64
N_HEAD = 4
D_K = 8
D_V = 8
LN_EPS = 1e-5       # nn.LayerNorm default
NEG_INF = -1e30     # finite "minus infinity" for masked_fill (avoids NaN rows)
# TODO(synk): fully-masked query rows yield a uniform attention row here instead
# of PyTorch's NaN row; enc_output is unaffected (zeroed by non_pad_mask).

# Row indices inside the packed (8, 128) bias / LayerNorm slab.
_V_BO, _V_B1, _V_B2, _V_LN1G, _V_LN1B, _V_LN2G, _V_LN2B = range(7)


def _layernorm(x, gamma, beta):
    # One-pass variance: E[x^2] - mu^2 (saves a full-tensor subtract + XLU pass).
    mu = jnp.mean(x, axis=-1, keepdims=True)
    ms = jnp.mean(x * x, axis=-1, keepdims=True)
    var = ms - mu * mu
    return (x - mu) * jax.lax.rsqrt(var + LN_EPS) * gamma + beta


def encoder_layer_kernel(x_ref, npm_ref, bias_ref, wqkv_ref, bqkv_ref, wo_ref,
                         w1_ref, w2_ref, vecs_ref, out_ref, attn_ref=None):
    x = x_ref[0]                     # (L, D)   one batch element per grid step
    npm = npm_ref[0]                 # (L, 1)   non_pad_mask
    residual = x
    L, D = x.shape

    # Packed bias / LayerNorm vectors: static slices of a single (8,128) slab.
    bo   = vecs_ref[_V_BO:_V_BO + 1,     0:D_MODEL]
    b1   = vecs_ref[_V_B1:_V_B1 + 1,     0:D_INNER]
    b2   = vecs_ref[_V_B2:_V_B2 + 1,     0:D_MODEL]
    ln1g = vecs_ref[_V_LN1G:_V_LN1G + 1, 0:D_MODEL]
    ln1b = vecs_ref[_V_LN1B:_V_LN1B + 1, 0:D_MODEL]
    ln2g = vecs_ref[_V_LN2G:_V_LN2G + 1, 0:D_MODEL]
    ln2b = vecs_ref[_V_LN2B:_V_LN2B + 1, 0:D_MODEL]

    # --- Multi-head self attention --------------------------------------
    # Head-batched projections: (H, L, Dk) directly, no lane slicing / stacks.
    # 1/sqrt(d_k) is pre-folded into the query weights & bias in the wrapper.
    xh = jnp.broadcast_to(x, (N_HEAD, L, D))                     # tiny copy of x
    q = jnp.einsum('hld,hdk->hlk', xh, wqkv_ref[0],
                   preferred_element_type=jnp.float32) + bqkv_ref[0]
    k = jnp.einsum('hld,hdk->hlk', xh, wqkv_ref[1],
                   preferred_element_type=jnp.float32) + bqkv_ref[1]
    v = jnp.einsum('hld,hdk->hlk', xh, wqkv_ref[2],
                   preferred_element_type=jnp.float32) + bqkv_ref[2]

    # Scores + additive key-padding bias (0 / NEG_INF), broadcast over heads.
    scores = jnp.einsum('hqd,hkd->hqk', q, k,
                        preferred_element_type=jnp.float32)      # (H, L, L)
    scores = scores + bias_ref[...]                              # (1, L, L) bias
    scores = scores - jnp.max(scores, axis=-1, keepdims=True)
    p = jnp.exp(scores)
    attn = p * pl.reciprocal(jnp.sum(p, axis=-1, keepdims=True), approx=True)

    if attn_ref is not None:
        # One contiguous store; (H, 1, L, L) block of the (H, B, L, L) output.
        attn_ref[...] = attn.reshape(N_HEAD, 1, L, L).astype(attn_ref.dtype)

    ctx = jnp.einsum('hqk,hkd->hqd', attn, v,
                     preferred_element_type=jnp.float32)         # (H, L, Dv)
    # Output projection: contract heads via batched matmul + leading-axis sum
    # (equivalent to concat-heads @ W_o, but with no relayout).
    proj = jnp.sum(jnp.einsum('hqd,hdm->hqm', ctx, wo_ref[...],
                              preferred_element_type=jnp.float32), axis=0) + bo
    # TODO(synk): dropout omitted (eval / inference mode -> identity).
    y = _layernorm(proj + residual, ln1g, ln1b) * npm            # *= non_pad_mask

    # --- Position-wise feed forward (Conv1d k=1 == per-position linear) --
    h1 = jnp.maximum(
        jnp.dot(y, w1_ref[...], preferred_element_type=jnp.float32) + b1, 0.0)
    h2 = jnp.dot(h1, w2_ref[...], preferred_element_type=jnp.float32) + b2
    z = _layernorm(h2 + y, ln2g, ln2b) * npm                     # *= non_pad_mask

    out_ref[0] = z.astype(out_ref.dtype)


def _pack_params(params):
    """Per-head weight tensors, packed qkv, and one (8,128) vector slab."""
    assert D_K == D_V, "packed qkv layout assumes d_k == d_v"
    inv = 1.0 / math.sqrt(D_K)

    def per_head(w, d_out):                       # (D, H*d_out) -> (H, D, d_out)
        return jnp.transpose(w.reshape(D_MODEL, N_HEAD, d_out), (1, 0, 2))

    wqkv_h = jnp.stack([per_head(params["wq"] * inv, D_K),
                        per_head(params["wk"], D_K),
                        per_head(params["wv"], D_V)], axis=0)    # (3, H, D, Dk)
    bqkv_h = jnp.stack([(params["bq"] * inv).reshape(N_HEAD, 1, D_K),
                        params["bk"].reshape(N_HEAD, 1, D_K),
                        params["bv"].reshape(N_HEAD, 1, D_V)], axis=0)  # (3, H, 1, Dk)
    wo_h = params["wo"].reshape(N_HEAD, D_V, D_MODEL)            # (H, Dv, D)

    def row(v):                                   # (1, n) -> (1, 128)
        return jnp.pad(v, ((0, 0), (0, 128 - v.shape[1])))

    vecs = jnp.concatenate([
        row(params["bo"]), row(params["b1"]), row(params["b2"]),
        row(params["ln1_g"]), row(params["ln1_b"]),
        row(params["ln2_g"]), row(params["ln2_b"]),
        jnp.zeros((1, 128), jnp.float32),
    ], axis=0)                                                    # (8, 128)
    return wqkv_h, bqkv_h, wo_h, params["w1"], params["w2"], vecs


def trf_encoder_layer(x, non_pad_mask, slf_attn_mask, params, *, return_attn=True):
    """x: (B, L, D) f32; non_pad_mask: (B, L, 1); slf_attn_mask: (B, L, L), nonzero == masked key."""
    B, L, D = x.shape
    assert D == D_MODEL
    wqkv_h, bqkv_h, wo_h, w1, w2, vecs = _pack_params(params)

    x_f = x.astype(jnp.float32)
    npm = non_pad_mask.astype(jnp.float32)
    # Additive attention bias: 0 where allowed, NEG_INF where masked (B, L, L).
    attn_bias = jnp.where(slf_attn_mask > 0, NEG_INF, 0.0).astype(jnp.float32)

    in_specs = [
        pl.BlockSpec((1, L, D_MODEL), lambda b: (b, 0, 0)),               # x
        pl.BlockSpec((1, L, 1), lambda b: (b, 0, 0)),                     # non_pad_mask
        pl.BlockSpec((1, L, L), lambda b: (b, 0, 0)),                     # attn bias
        pl.BlockSpec((3, N_HEAD, D_MODEL, D_K), lambda b: (0, 0, 0, 0)),  # wqkv (resident)
        pl.BlockSpec((3, N_HEAD, 1, D_K), lambda b: (0, 0, 0, 0)),        # bqkv
        pl.BlockSpec((N_HEAD, D_V, D_MODEL), lambda b: (0, 0, 0)),        # wo
        pl.BlockSpec((D_MODEL, D_INNER), lambda b: (0, 0)),               # w1
        pl.BlockSpec((D_INNER, D_MODEL), lambda b: (0, 0)),               # w2
        pl.BlockSpec((8, 128), lambda b: (0, 0)),                         # vec slab
    ]
    out_shape = [jax.ShapeDtypeStruct((B, L, D_MODEL), jnp.float32)]
    out_specs = [pl.BlockSpec((1, L, D_MODEL), lambda b: (b, 0, 0))]
    if return_attn:
        out_shape.append(jax.ShapeDtypeStruct((N_HEAD, B, L, L), jnp.float32))
        out_specs.append(pl.BlockSpec((N_HEAD, 1, L, L), lambda b: (0, b, 0, 0)))

    flops_per_b = (2 * L * D_MODEL * (3 * N_HEAD * D_K)     # QKV projections
                   + 2 * N_HEAD * L * L * D_K               # Q.K^T
                   + 2 * N_HEAD * L * L * D_V               # P.V
                   + 2 * L * (N_HEAD * D_V) * D_MODEL       # output projection
                   + 2 * L * D_MODEL * D_INNER              # FFN layer 1
                   + 2 * L * D_INNER * D_MODEL)             # FFN layer 2
    in_bytes = 4 * (x_f.size + npm.size + attn_bias.size + wqkv_h.size
                    + bqkv_h.size + wo_h.size + w1.size + w2.size + vecs.size)
    out_bytes = 4 * (B * L * D_MODEL + (N_HEAD * B * L * L if return_attn else 0))
    cost = pl.CostEstimate(flops=B * flops_per_b,
                           transcendentals=B * N_HEAD * L * L,
                           bytes_accessed=int(in_bytes + out_bytes))

    results = pl.pallas_call(
        encoder_layer_kernel,
        out_shape=tuple(out_shape),
        grid_spec=pltpu.PrefetchScalarGridSpec(
            num_scalar_prefetch=0,
            grid=(B,),
            in_specs=in_specs,
            out_specs=tuple(out_specs)),
        compiler_params=pltpu.CompilerParams(
            dimension_semantics=("parallel",),          # batch tiles -> both TCs on v7x
            vmem_limit_bytes=32 * 1024 * 1024),
        cost_estimate=cost,
    )(x_f, npm, attn_bias, wqkv_h, bqkv_h, wo_h, w1, w2, vecs)

    out = results[0]
    if return_attn:
        # (H, B, L, L) -> (H*B, L, L): free leading-dim merge, matches PyTorch layout.
        return out, results[1].reshape(N_HEAD * B, L, L)
    return out, None


def _reference(x, non_pad_mask, slf_attn_mask, params):
    """Pure-JAX replica of the PyTorch TrfEncoderLayer forward (eval mode)."""
    B, L, _ = x.shape

    def split_heads(t, d):                        # (B, L, H*d) -> (H*B, L, d), head-major
        t = t.reshape(B, L, N_HEAD, d)
        return jnp.transpose(t, (2, 0, 1, 3)).reshape(N_HEAD * B, L, d)

    q = split_heads(x @ params["wq"] + params["bq"], D_K)
    k = split_heads(x @ params["wk"] + params["bk"], D_K)
    v = split_heads(x @ params["wv"] + params["bv"], D_V)
    scores = jnp.einsum('zqd,zkd->zqk', q, k) / math.sqrt(D_K)
    mask = jnp.tile(slf_attn_mask > 0, (N_HEAD, 1, 1))
    scores = jnp.where(mask, -jnp.inf, scores)
    attn = jax.nn.softmax(scores, axis=-1)
    heads = jnp.einsum('zqk,zkd->zqd', attn, v).reshape(N_HEAD, B, L, D_V)
    ctx = jnp.transpose(heads, (1, 2, 0, 3)).reshape(B, L, N_HEAD * D_V)
    proj = ctx @ params["wo"] + params["bo"]

    def ln(t, g, b):
        mu = t.mean(-1, keepdims=True)
        var = ((t - mu) ** 2).mean(-1, keepdims=True)
        return (t - mu) / jnp.sqrt(var + LN_EPS) * g + b

    y = ln(proj + x, params["ln1_g"], params["ln1_b"]) * non_pad_mask
    h = jnp.maximum(y @ params["w1"] + params["b1"], 0.0)
    z = ln(h @ params["w2"] + params["b2"] + y, params["ln2_g"], params["ln2_b"]) * non_pad_mask
    return z, attn


def make_params(key):
    ks = jax.random.split(key, 8)
    scale = 0.05
    return {
        "wq": scale * jax.random.normal(ks[0], (D_MODEL, N_HEAD * D_K), jnp.float32),
        "bq": jnp.zeros((1, N_HEAD * D_K), jnp.float32),
        "wk": scale * jax.random.normal(ks[1], (D_MODEL, N_HEAD * D_K), jnp.float32),
        "bk": jnp.zeros((1, N_HEAD * D_K), jnp.float32),
        "wv": scale * jax.random.normal(ks[2], (D_MODEL, N_HEAD * D_V), jnp.float32),
        "bv": jnp.zeros((1, N_HEAD * D_V), jnp.float32),
        "wo": scale * jax.random.normal(ks[3], (N_HEAD * D_V, D_MODEL), jnp.float32),
        "bo": jnp.zeros((1, D_MODEL), jnp.float32),
        "ln1_g": jnp.ones((1, D_MODEL), jnp.float32),
        "ln1_b": jnp.zeros((1, D_MODEL), jnp.float32),
        "w1": scale * jax.random.normal(ks[4], (D_MODEL, D_INNER), jnp.float32),
        "b1": jnp.zeros((1, D_INNER), jnp.float32),
        "w2": scale * jax.random.normal(ks[5], (D_INNER, D_MODEL), jnp.float32),
        "b2": jnp.zeros((1, D_MODEL), jnp.float32),
        "ln2_g": jnp.ones((1, D_MODEL), jnp.float32),
        "ln2_b": jnp.zeros((1, D_MODEL), jnp.float32),
    }


if __name__ == "__main__":
    B, L = 2, 8
    key = jax.random.PRNGKey(0)
    k_x, k_p = jax.random.split(key)

    x = jax.random.normal(k_x, (B, L, D_MODEL), jnp.float32)

    # batch 0: all 8 positions valid; batch 1: last 2 positions are padding.
    valid = jnp.array([[1.0] * 8, [1.0] * 6 + [0.0] * 2], dtype=jnp.float32)   # (B, L)
    non_pad_mask = valid[:, :, None]                                            # (B, L, 1)
    # key-padding attention mask: 1.0 where the key position is padded.
    slf_attn_mask = jnp.broadcast_to((1.0 - valid)[:, None, :], (B, L, L)).astype(jnp.float32)

    params = make_params(k_p)

    enc_out, enc_slf_attn = trf_encoder_layer(x, non_pad_mask, slf_attn_mask, params)
    jax.block_until_ready((enc_out, enc_slf_attn))

    assert enc_out.shape == (B, L, D_MODEL)
    assert enc_slf_attn.shape == (N_HEAD * B, L, L)
    assert bool(jnp.all(jnp.isfinite(enc_out)))

    # Numerical sanity check against a pure-JAX replica of the PyTorch forward.
    with jax.default_matmul_precision("highest"):
        ref_out, ref_attn = _reference(x, non_pad_mask, slf_attn_mask, params)
    assert float(jnp.max(jnp.abs(enc_out - ref_out))) < 2e-2
    assert float(jnp.max(jnp.abs(enc_slf_attn - ref_attn))) < 2e-2

    # Also exercise the attention-free path (skips the O(H*B*L^2) HBM write).
    enc_out2, _ = trf_encoder_layer(x, non_pad_mask, slf_attn_mask, params,
                                    return_attn=False)
    jax.block_until_ready(enc_out2)
    assert float(jnp.max(jnp.abs(enc_out2 - ref_out))) < 2e-2

    print("KERNEL_OK")
</pallas_src>

<mosaic_0001>
module attributes {stable_mosaic.version = 11 : i64} {
  func.func @encoder_layer_kernel(%arg0: i32, %arg1: memref<1x8x32xf32, #tpu.memory_space<vmem>>, %arg2: memref<1x8x1xf32, #tpu.memory_space<vmem>>, %arg3: memref<1x8x8xf32, #tpu.memory_space<vmem>>, %arg4: memref<3x4x32x8xf32, #tpu.memory_space<vmem>>, %arg5: memref<3x4x1x8xf32, #tpu.memory_space<vmem>>, %arg6: memref<4x8x32xf32, #tpu.memory_space<vmem>>, %arg7: memref<32x64xf32, #tpu.memory_space<vmem>>, %arg8: memref<64x32xf32, #tpu.memory_space<vmem>>, %arg9: memref<8x128xf32, #tpu.memory_space<vmem>>, %arg10: memref<1x8x32xf32, #tpu.memory_space<vmem>>, %arg11: memref<4x1x8x8xf32, #tpu.memory_space<vmem>>) attributes {dimension_semantics = [#tpu.dimension_semantics<parallel>], iteration_bounds = array<i64: 2>, scalar_prefetch = 0 : i64, scratch_operands = 0 : i64, tpu.core_type = #tpu.core_type<tc>, window_params = [{transform_indices = @transform_0, window_bounds = array<i64: 1, 8, 32>}, {transform_indices = @transform_1, window_bounds = array<i64: 1, 8, 1>}, {transform_indices = @transform_2, window_bounds = array<i64: 1, 8, 8>}, {pipeline_mode = #tpu.pipeline_mode<synchronous>, transform_indices = @transform_3, window_bounds = array<i64: 3, 4, 32, 8>}, {pipeline_mode = #tpu.pipeline_mode<synchronous>, transform_indices = @transform_4, window_bounds = array<i64: 3, 4, 1, 8>}, {pipeline_mode = #tpu.pipeline_mode<synchronous>, transform_indices = @transform_5, window_bounds = array<i64: 4, 8, 32>}, {pipeline_mode = #tpu.pipeline_mode<synchronous>, transform_indices = @transform_6, window_bounds = array<i64: 32, 64>}, {pipeline_mode = #tpu.pipeline_mode<synchronous>, transform_indices = @transform_7, window_bounds = array<i64: 64, 32>}, {pipeline_mode = #tpu.pipeline_mode<synchronous>, transform_indices = @transform_8, window_bounds = array<i64: 8, 128>}, {transform_indices = @transform_9, window_bounds = array<i64: 1, 8, 32>}, {transform_indices = @transform_10, window_bounds = array<i64: 4, 1, 8, 8>}]} {
    %c0 = arith.constant 0 : index
    %c0_0 = arith.constant 0 : index
    %c0_1 = arith.constant 0 : index
    %0 = vector.load %arg1[%c0, %c0_0, %c0_1] : memref<1x8x32xf32, #tpu.memory_space<vmem>>, vector<1x8x32xf32>
    %1 = vector.shape_cast %0 : vector<1x8x32xf32> to vector<8x32xf32>
    %c0_2 = arith.constant 0 : index
    %c0_3 = arith.constant 0 : index
    %c0_4 = arith.constant 0 : index
    %2 = vector.load %arg2[%c0_2, %c0_3, %c0_4] : memref<1x8x1xf32, #tpu.memory_space<vmem>>, vector<1x8x1xf32>
    %3 = vector.shape_cast %2 : vector<1x8x1xf32> to vector<8x1xf32>
    %c0_5 = arith.constant 0 : index
    %c0_6 = arith.constant 0 : index
    %4 = vector.load %arg9[%c0_5, %c0_6] : memref<8x128xf32, #tpu.memory_space<vmem>>, vector<1x32xf32>
    %c1 = arith.constant 1 : index
    %c0_7 = arith.constant 0 : index
    %5 = vector.load %arg9[%c1, %c0_7] : memref<8x128xf32, #tpu.memory_space<vmem>>, vector<1x64xf32>
    %c2 = arith.constant 2 : index
    %c0_8 = arith.constant 0 : index
    %6 = vector.load %arg9[%c2, %c0_8] : memref<8x128xf32, #tpu.memory_space<vmem>>, vector<1x32xf32>
    %c3 = arith.constant 3 : index
    %c0_9 = arith.constant 0 : index
    %7 = vector.load %arg9[%c3, %c0_9] : memref<8x128xf32, #tpu.memory_space<vmem>>, vector<1x32xf32>
    %c4 = arith.constant 4 : index
    %c0_10 = arith.constant 0 : index
    %8 = vector.load %arg9[%c4, %c0_10] : memref<8x128xf32, #tpu.memory_space<vmem>>, vector<1x32xf32>
    %c5 = arith.constant 5 : index
    %c0_11 = arith.constant 0 : index
    %9 = vector.load %arg9[%c5, %c0_11] : memref<8x128xf32, #tpu.memory_space<vmem>>, vector<1x32xf32>
    %c6 = arith.constant 6 : index
    %c0_12 = arith.constant 0 : index
    %10 = vector.load %arg9[%c6, %c0_12] : memref<8x128xf32, #tpu.memory_space<vmem>>, vector<1x32xf32>
    %11 = vector.shape_cast %1 : vector<8x32xf32> to vector<1x8x32xf32>
    %12 = vector.broadcast %11 : vector<1x8x32xf32> to vector<4x8x32xf32>
    %c0_13 = arith.constant 0 : index
    %c0_14 = arith.constant 0 : index
    %c0_15 = arith.constant 0 : index
    %c0_16 = arith.constant 0 : index
    %13 = vector.load %arg4[%c0_13, %c0_14, %c0_15, %c0_16] : memref<3x4x32x8xf32, #tpu.memory_space<vmem>>, vector<1x4x32x8xf32>
    %14 = vector.shape_cast %13 : vector<1x4x32x8xf32> to vector<4x32x8xf32>
    "tpu.trace_start"() <{level = 10 : i32, message = "hld,hdk->hlk"}> : () -> ()
    %cst = arith.constant dense<0.000000e+00> : vector<4x8x8xf32>
    %15 = tpu.matmul %12, %14, %cst {dimension_numbers = #tpu.dot_dimension_numbers<[2], [1], [1], [2], [0, 0, 0, 1, 1, 2], [0], [0]>} : vector<4x8x32xf32>, vector<4x32x8xf32>, vector<4x8x8xf32> -> vector<4x8x8xf32>
    "tpu.trace_stop"() : () -> ()
    %c0_17 = arith.constant 0 : index
    %c0_18 = arith.constant 0 : index
    %c0_19 = arith.constant 0 : index
    %c0_20 = arith.constant 0 : index
    %16 = vector.load %arg5[%c0_17, %c0_18, %c0_19, %c0_20] : memref<3x4x1x8xf32, #tpu.memory_space<vmem>>, vector<1x4x1x8xf32>
    %17 = vector.shape_cast %16 : vector<1x4x1x8xf32> to vector<4x1x8xf32>
    %18 = vector.broadcast %17 : vector<4x1x8xf32> to vector<4x8x8xf32>
    %19 = arith.addf %15, %18 : vector<4x8x8xf32>
    %c1_21 = arith.constant 1 : index
    %c0_22 = arith.constant 0 : index
    %c0_23 = arith.constant 0 : index
    %c0_24 = arith.constant 0 : index
    %20 = vector.load %arg4[%c1_21, %c0_22, %c0_23, %c0_24] : memref<3x4x32x8xf32, #tpu.memory_space<vmem>>, vector<1x4x32x8xf32>
    %21 = vector.shape_cast %20 : vector<1x4x32x8xf32> to vector<4x32x8xf32>
    "tpu.trace_start"() <{level = 10 : i32, message = "hld,hdk->hlk"}> : () -> ()
    %cst_25 = arith.constant dense<0.000000e+00> : vector<4x8x8xf32>
    %22 = tpu.matmul %12, %21, %cst_25 {dimension_numbers = #tpu.dot_dimension_numbers<[2], [1], [1], [2], [0, 0, 0, 1, 1, 2], [0], [0]>} : vector<4x8x32xf32>, vector<4x32x8xf32>, vector<4x8x8xf32> -> vector<4x8x8xf32>
    "tpu.trace_stop"() : () -> ()
    %c1_26 = arith.constant 1 : index
    %c0_27 = arith.constant 0 : index
    %c0_28 = arith.constant 0 : index
    %c0_29 = arith.constant 0 : index
    %23 = vector.load %arg5[%c1_26, %c0_27, %c0_28, %c0_29] : memref<3x4x1x8xf32, #tpu.memory_space<vmem>>, vector<1x4x1x8xf32>
    %24 = vector.shape_cast %23 : vector<1x4x1x8xf32> to vector<4x1x8xf32>
    %25 = vector.broadcast %24 : vector<4x1x8xf32> to vector<4x8x8xf32>
    %26 = arith.addf %22, %25 : vector<4x8x8xf32>
    %c2_30 = arith.constant 2 : index
    %c0_31 = arith.constant 0 : index
    %c0_32 = arith.constant 0 : index
    %c0_33 = arith.constant 0 : index
    %27 = vector.load %arg4[%c2_30, %c0_31, %c0_32, %c0_33] : memref<3x4x32x8xf32, #tpu.memory_space<vmem>>, vector<1x4x32x8xf32>
    %28 = vector.shape_cast %27 : vector<1x4x32x8xf32> to vector<4x32x8xf32>
    "tpu.trace_start"() <{level = 10 : i32, message = "hld,hdk->hlk"}> : () -> ()
    %cst_34 = arith.constant dense<0.000000e+00> : vector<4x8x8xf32>
    %29 = tpu.matmul %12, %28, %cst_34 {dimension_numbers = #tpu.dot_dimension_numbers<[2], [1], [1], [2], [0, 0, 0, 1, 1, 2], [0], [0]>} : vector<4x8x32xf32>, vector<4x32x8xf32>, vector<4x8x8xf32> -> vector<4x8x8xf32>
    "tpu.trace_stop"() : () -> ()
    %c2_35 = arith.constant 2 : index
    %c0_36 = arith.constant 0 : index
    %c0_37 = arith.constant 0 : index
    %c0_38 = arith.constant 0 : index
    %30 = vector.load %arg5[%c2_35, %c0_36, %c0_37, %c0_38] : memref<3x4x1x8xf32, #tpu.memory_space<vmem>>, vector<1x4x1x8xf32>
    %31 = vector.shape_cast %30 : vector<1x4x1x8xf32> to vector<4x1x8xf32>
    %32 = vector.broadcast %31 : vector<4x1x8xf32> to vector<4x8x8xf32>
    %33 = arith.addf %29, %32 : vector<4x8x8xf32>
    "tpu.trace_start"() <{level = 10 : i32, message = "hqd,hkd->hqk"}> : () -> ()
    %cst_39 = arith.constant dense<0.000000e+00> : vector<4x8x8xf32>
    %34 = tpu.matmul %19, %26, %cst_39 {dimension_numbers = #tpu.dot_dimension_numbers<[2], [2], [1], [1], [0, 0, 0, 1, 1, 1], [0], [0]>} : vector<4x8x8xf32>, vector<4x8x8xf32>, vector<4x8x8xf32> -> vector<4x8x8xf32>
    "tpu.trace_stop"() : () -> ()
    %c0_40 = arith.constant 0 : index
    %c0_41 = arith.constant 0 : index
    %c0_42 = arith.constant 0 : index
    %35 = vector.load %arg3[%c0_40, %c0_41, %c0_42] : memref<1x8x8xf32, #tpu.memory_space<vmem>>, vector<1x8x8xf32>
    %36 = vector.broadcast %35 : vector<1x8x8xf32> to vector<4x8x8xf32>
    %37 = arith.addf %34, %36 : vector<4x8x8xf32>
    %cst_43 = arith.constant dense<0xFF800000> : vector<4x8xf32>
    %38 = vector.multi_reduction <maximumf>, %37, %cst_43 [2] : vector<4x8x8xf32> to vector<4x8xf32>
    %39 = vector.shape_cast %38 : vector<4x8xf32> to vector<4x8x1xf32>
    %40 = vector.broadcast %39 : vector<4x8x1xf32> to vector<4x8x8xf32>
    %41 = arith.subf %37, %40 : vector<4x8x8xf32>
    %42 = math.exp %41 : vector<4x8x8xf32>
    %cst_44 = arith.constant dense<0.000000e+00> : vector<4x8xf32>
    %43 = vector.multi_reduction <add>, %42, %cst_44 [2] : vector<4x8x8xf32> to vector<4x8xf32>
    %44 = vector.shape_cast %43 : vector<4x8xf32> to vector<4x8x1xf32>
    %45 = tpu.reciprocal %44 {approx = true} : vector<4x8x1xf32> -> vector<4x8x1xf32>
    %46 = vector.broadcast %45 : vector<4x8x1xf32> to vector<4x8x8xf32>
    %47 = arith.mulf %42, %46 : vector<4x8x8xf32>
    %48 = vector.shape_cast %47 : vector<4x8x8xf32> to vector<4x1x8x8xf32>
    %c0_45 = arith.constant 0 : index
    %c0_46 = arith.constant 0 : index
    %c0_47 = arith.constant 0 : index
    %c0_48 = arith.constant 0 : index
    %49 = vector.load %arg11[%c0_45, %c0_46, %c0_47, %c0_48] : memref<4x1x8x8xf32, #tpu.memory_space<vmem>>, vector<4x1x8x8xf32>
    tpu.vector_store %arg11[%c0_45, %c0_46, %c0_47, %c0_48], %48 {strides = array<i32>} : memref<4x1x8x8xf32, #tpu.memory_space<vmem>>, vector<4x1x8x8xf32>,
    "tpu.trace_start"() <{level = 10 : i32, message = "hqk,hkd->hqd"}> : () -> ()
    %cst_49 = arith.constant dense<0.000000e+00> : vector<4x8x8xf32>
    %50 = tpu.matmul %47, %33, %cst_49 {dimension_numbers = #tpu.dot_dimension_numbers<[2], [1], [1], [2], [0, 0, 0, 1, 1, 2], [0], [0]>} : vector<4x8x8xf32>, vector<4x8x8xf32>, vector<4x8x8xf32> -> vector<4x8x8xf32>
    "tpu.trace_stop"() : () -> ()
    %c0_50 = arith.constant 0 : index
    %c0_51 = arith.constant 0 : index
    %c0_52 = arith.constant 0 : index
    %51 = vector.load %arg6[%c0_50, %c0_51, %c0_52] : memref<4x8x32xf32, #tpu.memory_space<vmem>>, vector<4x8x32xf32>
    "tpu.trace_start"() <{level = 10 : i32, message = "hqd,hdm->hqm"}> : () -> ()
    %cst_53 = arith.constant dense<0.000000e+00> : vector<4x8x32xf32>
    %52 = tpu.matmul %50, %51, %cst_53 {dimension_numbers = #tpu.dot_dimension_numbers<[2], [1], [1], [2], [0, 0, 0, 1, 1, 2], [0], [0]>} : vector<4x8x8xf32>, vector<4x8x32xf32>, vector<4x8x32xf32> -> vector<4x8x32xf32>
    "tpu.trace_stop"() : () -> ()
    %cst_54 = arith.constant dense<0.000000e+00> : vector<8x32xf32>
    %53 = vector.multi_reduction <add>, %52, %cst_54 [0] : vector<4x8x32xf32> to vector<8x32xf32>
    %54 = vector.broadcast %4 : vector<1x32xf32> to vector<8x32xf32>
    %55 = arith.addf %53, %54 : vector<8x32xf32>
    %56 = arith.addf %55, %1 : vector<8x32xf32>
    %cst_55 = arith.constant dense<0.000000e+00> : vector<8xf32>
    %57 = vector.multi_reduction <add>, %56, %cst_55 [1] : vector<8x32xf32> to vector<8xf32>
    %58 = vector.shape_cast %57 : vector<8xf32> to vector<8x1xf32>
    %cst_56 = arith.constant 3.200000e+01 : f32
    %59 = vector.broadcast %cst_56 : f32 to vector<8x1xf32>
    %60 = arith.divf %58, %59 : vector<8x1xf32>
    %61 = arith.mulf %56, %56 : vector<8x32xf32>
    %cst_57 = arith.constant dense<0.000000e+00> : vector<8xf32>
    %62 = vector.multi_reduction <add>, %61, %cst_57 [1] : vector<8x32xf32> to vector<8xf32>
    %63 = vector.shape_cast %62 : vector<8xf32> to vector<8x1xf32>
    %cst_58 = arith.constant 3.200000e+01 : f32
    %64 = vector.broadcast %cst_58 : f32 to vector<8x1xf32>
    %65 = arith.divf %63, %64 : vector<8x1xf32>
    %66 = arith.mulf %60, %60 : vector<8x1xf32>
    %67 = arith.subf %65, %66 : vector<8x1xf32>
    %68 = vector.broadcast %60 : vector<8x1xf32> to vector<8x32xf32>
    %69 = arith.subf %56, %68 : vector<8x32xf32>
    %cst_59 = arith.constant 9.99999974E-6 : f32
    %70 = vector.broadcast %cst_59 : f32 to vector<8x1xf32>
    %71 = arith.addf %67, %70 : vector<8x1xf32>
    %72 = math.rsqrt %71 : vector<8x1xf32>
    %73 = vector.broadcast %72 : vector<8x1xf32> to vector<8x32xf32>
    %74 = arith.mulf %69, %73 : vector<8x32xf32>
    %75 = vector.broadcast %7 : vector<1x32xf32> to vector<8x32xf32>
    %76 = arith.mulf %74, %75 : vector<8x32xf32>
    %77 = vector.broadcast %8 : vector<1x32xf32> to vector<8x32xf32>
    %78 = arith.addf %76, %77 : vector<8x32xf32>
    %79 = vector.broadcast %3 : vector<8x1xf32> to vector<8x32xf32>
    %80 = arith.mulf %78, %79 : vector<8x32xf32>
    %c0_60 = arith.constant 0 : index
    %c0_61 = arith.constant 0 : index
    %81 = vector.load %arg7[%c0_60, %c0_61] : memref<32x64xf32, #tpu.memory_space<vmem>>, vector<32x64xf32>
    %cst_62 = arith.constant dense<0.000000e+00> : vector<8x64xf32>
    %82 = tpu.matmul %80, %81, %cst_62 {dimension_numbers = #tpu.dot_dimension_numbers<[1], [0], [0], [1], [0, 0, 1, 1], [], []>} : vector<8x32xf32>, vector<32x64xf32>, vector<8x64xf32> -> vector<8x64xf32>
    %83 = vector.broadcast %5 : vector<1x64xf32> to vector<8x64xf32>
    %84 = arith.addf %82, %83 : vector<8x64xf32>
    %cst_63 = arith.constant 0.000000e+00 : f32
    %85 = vector.broadcast %cst_63 : f32 to vector<8x64xf32>
    %86 = arith.maximumf %84, %85 : vector<8x64xf32>
    %c0_64 = arith.constant 0 : index
    %c0_65 = arith.constant 0 : index
    %87 = vector.load %arg8[%c0_64, %c0_65] : memref<64x32xf32, #tpu.memory_space<vmem>>, vector<64x32xf32>
    %cst_66 = arith.constant dense<0.000000e+00> : vector<8x32xf32>
    %88 = tpu.matmul %86, %87, %cst_66 {dimension_numbers = #tpu.dot_dimension_numbers<[1], [0], [0], [1], [0, 0, 1, 1], [], []>} : vector<8x64xf32>, vector<64x32xf32>, vector<8x32xf32> -> vector<8x32xf32>
    %89 = vector.broadcast %6 : vector<1x32xf32> to vector<8x32xf32>
    %90 = arith.addf %88, %89 : vector<8x32xf32>
    %91 = arith.addf %90, %80 : vector<8x32xf32>
    %cst_67 = arith.constant dense<0.000000e+00> : vector<8xf32>
    %92 = vector.multi_reduction <add>, %91, %cst_67 [1] : vector<8x32xf32> to vector<8xf32>
    %93 = vector.shape_cast %92 : vector<8xf32> to vector<8x1xf32>
    %cst_68 = arith.constant 3.200000e+01 : f32
    %94 = vector.broadcast %cst_68 : f32 to vector<8x1xf32>
    %95 = arith.divf %93, %94 : vector<8x1xf32>
    %96 = arith.mulf %91, %91 : vector<8x32xf32>
    %cst_69 = arith.constant dense<0.000000e+00> : vector<8xf32>
    %97 = vector.multi_reduction <add>, %96, %cst_69 [1] : vector<8x32xf32> to vector<8xf32>
    %98 = vector.shape_cast %97 : vector<8xf32> to vector<8x1xf32>
    %cst_70 = arith.constant 3.200000e+01 : f32
    %99 = vector.broadcast %cst_70 : f32 to vector<8x1xf32>
    %100 = arith.divf %98, %99 : vector<8x1xf32>
    %101 = arith.mulf %95, %95 : vector<8x1xf32>
    %102 = arith.subf %100, %101 : vector<8x1xf32>
    %103 = vector.broadcast %95 : vector<8x1xf32> to vector<8x32xf32>
    %104 = arith.subf %91, %103 : vector<8x32xf32>
    %cst_71 = arith.constant 9.99999974E-6 : f32
    %105 = vector.broadcast %cst_71 : f32 to vector<8x1xf32>
    %106 = arith.addf %102, %105 : vector<8x1xf32>
    %107 = math.rsqrt %106 : vector<8x1xf32>
    %108 = vector.broadcast %107 : vector<8x1xf32> to vector<8x32xf32>
    %109 = arith.mulf %104, %108 : vector<8x32xf32>
    %110 = vector.broadcast %9 : vector<1x32xf32> to vector<8x32xf32>
    %111 = arith.mulf %109, %110 : vector<8x32xf32>
    %112 = vector.broadcast %10 : vector<1x32xf32> to vector<8x32xf32>
    %113 = arith.addf %111, %112 : vector<8x32xf32>
    %114 = vector.broadcast %3 : vector<8x1xf32> to vector<8x32xf32>
    %115 = arith.mulf %113, %114 : vector<8x32xf32>
    %c0_72 = arith.constant 0 : index
    %c0_73 = arith.constant 0 : index
    %c0_74 = arith.constant 0 : index
    %116 = vector.load %arg10[%c0_72, %c0_73, %c0_74] : memref<1x8x32xf32, #tpu.memory_space<vmem>>, vector<1x8x32xf32>
    %117 = vector.shape_cast %116 : vector<1x8x32xf32> to vector<8x32xf32>
    %118 = vector.shape_cast %115 : vector<8x32xf32> to vector<1x8x32xf32>
    tpu.vector_store %arg10[%c0_72, %c0_73, %c0_74], %118 {strides = array<i32>} : memref<1x8x32xf32, #tpu.memory_space<vmem>>, vector<1x8x32xf32>,
    return
  }
  func.func @transform_0(%arg0: i32) -> (i32, i32, i32) {
    %c0_i32 = arith.constant 0 : i32
    %c0_i32_0 = arith.constant 0 : i32
    %c0_i32_1 = arith.constant 0 : i32
    return %arg0, %c0_i32, %c0_i32_0 : i32, i32, i32
  }
  func.func @transform_1(%arg0: i32) -> (i32, i32, i32) {
    %c0_i32 = arith.constant 0 : i32
    %c0_i32_0 = arith.constant 0 : i32
    %c0_i32_1 = arith.constant 0 : i32
    return %arg0, %c0_i32, %c0_i32_0 : i32, i32, i32
  }
  func.func @transform_2(%arg0: i32) -> (i32, i32, i32) {
    %c0_i32 = arith.constant 0 : i32
    %c0_i32_0 = arith.constant 0 : i32
    %c0_i32_1 = arith.constant 0 : i32
    return %arg0, %c0_i32, %c0_i32_0 : i32, i32, i32
  }
  func.func @transform_3(%arg0: i32) -> (i32, i32, i32, i32) {
    %c0_i32 = arith.constant 0 : i32
    %c0_i32_0 = arith.constant 0 : i32
    %c0_i32_1 = arith.constant 0 : i32
    %c0_i32_2 = arith.constant 0 : i32
    %c0_i32_3 = arith.constant 0 : i32
    return %c0_i32, %c0_i32_0, %c0_i32_1, %c0_i32_2 : i32, i32, i32, i32
  }
  func.func @transform_4(%arg0: i32) -> (i32, i32, i32, i32) {
    %c0_i32 = arith.constant 0 : i32
    %c0_i32_0 = arith.constant 0 : i32
    %c0_i32_1 = arith.constant 0 : i32
    %c0_i32_2 = arith.constant 0 : i32
    %c0_i32_3 = arith.constant 0 : i32
    return %c0_i32, %c0_i32_0, %c0_i32_1, %c0_i32_2 : i32, i32, i32, i32
  }
  func.func @transform_5(%arg0: i32) -> (i32, i32, i32) {
    %c0_i32 = arith.constant 0 : i32
    %c0_i32_0 = arith.constant 0 : i32
    %c0_i32_1 = arith.constant 0 : i32
    %c0_i32_2 = arith.constant 0 : i32
    return %c0_i32, %c0_i32_0, %c0_i32_1 : i32, i32, i32
  }
  func.func @transform_6(%arg0: i32) -> (i32, i32) {
    %c0_i32 = arith.constant 0 : i32
    %c0_i32_0 = arith.constant 0 : i32
    %c0_i32_1 = arith.constant 0 : i32
    return %c0_i32, %c0_i32_0 : i32, i32
  }
  func.func @transform_7(%arg0: i32) -> (i32, i32) {
    %c0_i32 = arith.constant 0 : i32
    %c0_i32_0 = arith.constant 0 : i32
    %c0_i32_1 = arith.constant 0 : i32
    return %c0_i32, %c0_i32_0 : i32, i32
  }
  func.func @transform_8(%arg0: i32) -> (i32, i32) {
    %c0_i32 = arith.constant 0 : i32
    %c0_i32_0 = arith.constant 0 : i32
    %c0_i32_1 = arith.constant 0 : i32
    return %c0_i32, %c0_i32_0 : i32, i32
  }
  func.func @transform_9(%arg0: i32) -> (i32, i32, i32) {
    %c0_i32 = arith.constant 0 : i32
    %c0_i32_0 = arith.constant 0 : i32
    %c0_i32_1 = arith.constant 0 : i32
    return %arg0, %c0_i32, %c0_i32_0 : i32, i32, i32
  }
  func.func @transform_10(%arg0: i32) -> (i32, i32, i32, i32) {
    %c0_i32 = arith.constant 0 : i32
    %c0_i32_0 = arith.constant 0 : i32
    %c0_i32_1 = arith.constant 0 : i32
    %c0_i32_2 = arith.constant 0 : i32
    return %c0_i32, %arg0, %c0_i32_0, %c0_i32_1 : i32, i32, i32, i32
  }
}

</mosaic_0001>

<bundles_post_ra>
// kernel: tpu_custom_call.1
= control target key start
LH: loop header
LB: loop body
LE: loop exit
PB: predicated region body
PF: predicated region fallthrough
CT: control target
= control target key end

     0   :  { %s4043_s0 = inlined_call_operand.vmem [shape: f32[2,8,32], index: 0, kind: input, shape index: {}]   ;;  %s4044_s1 = inlined_call_operand.vmem [shape: f32[2,8,1], index: 1, kind: input, shape index: {}]   ;;  %s4045_s2 = inlined_call_operand.vmem [shape: f32[2,8,8], index: 2, kind: input, shape index: {}]   ;;  %s4046_s3 = inlined_call_operand.vmem [shape: f32[3,4,32,8], index: 3, kind: input, shape index: {}]   ;;  %s4047_s4 = inlined_call_operand.vmem [shape: f32[3,4,1,8], index: 4, kind: input, shape index: {}]   ;;  %s4048_s5 = inlined_call_operand.vmem [shape: f32[4,8,32], index: 5, kind: input, shape index: {}]   ;;  %s4049_s6 = inlined_call_operand.vmem [shape: f32[32,64], index: 6, kind: input, shape index: {}]   ;;  %s4050_s7 = inlined_call_operand.vmem [shape: f32[64,32], index: 7, kind: input, shape index: {}]   ;;  %s4051_s8 = inlined_call_operand.vmem [shape: f32[8,128], index: 8, kind: input, shape index: {}]   ;;  %s4052_s9 = inlined_call_operand.hbm [shape: f32[2,8,32], index: 9, kind: output, shape index: {0}]   ;;  %s4053_s10 = inlined_call_operand.hbm [shape: f32[4,2,8,8], index: 10, kind: output, shape index: {1}]  }
   0x1   :  { %4054 = sst [smem:[#allocation8_spill]] %s4043_s0 }
   0x2   :  { %4055 = sst [smem:[#allocation9_spill]] %s4045_s2 }
   0x3   :  { %4056 = sst [smem:[#allocation10_spill]] %s4046_s3 }
   0x4   :  { %16 = vsyncpa [#allocation3], 0 }
   0x5   :  { %18 = vsyncpa [#allocation3 + $0x1], 0 }
   0x6   :  { %19 = vsyncpa [#allocation5], 0 }
   0x7   :  { %21 = vsyncpa [#allocation5 + $0x1], 0  ;;  %s3467_s13 = smov 0   ;;  %s3469_s14 = smov 0  }
   0x8   :  { %s3471_s15 = smov 0   ;;  %s3473_s16 = smov 0  }
   0x9 LB: > { %s3488_s17 = sadd.s32 4294967295, %s3401_s16   ;;  %s2721_s18 = sadd.s32 4294967294, %s3401_s16   ;;  %s3401_s16 = sphi %s3473_s16, %s4065_s16   ;;  %s3397_s15 = sphi %s3471_s15, %s4064_s15   ;;  %s3393_s14 = sphi %s3469_s14, %s4063_s14   ;;  %s3389_s13 = sphi %s3467_s13, %s4062_s13  }
   0xa   : > { %s3492_s19 = sadd.s32 1, %s3401_s16   ;;  %s238_s20 = sadd.s32 1, %s3397_s15 }
   0xb   : > { %s235_s21 = ssub.s32 %s3401_s16, %s3492_s19  ;;  %p248_p0 = scmp.ne.s32.totalorder %s3397_s15, %s3393_s14 }
   0xc   : > { %p236_p1 = scmp.eq.s32.totalorder %s235_s21, 0  ;;  %p249_p2 = scmp.eq.s32.totalorder %s3488_s17, 1 }
   0xd   : > { %p254_p3 = scmp.ne.s32.totalorder %s3393_s14, %s3389_s13  ;;  %p255_p4 = scmp.eq.s32.totalorder %s2721_s18, 1 }
   0xe   : > { %s3503_s22 = scalar_select %p236_p1, %s3397_s15, %s238_s20  }
   0xf   : > { %p3505_p5 = por %p249_p2, %p248_p0  ;;  %p3509_p6 = por %p255_p4, %p254_p3 }
  0x10   : > { %p2724_p7 = scmp.ge.s32.totalorder %s3401_s16, 1  ;;  %p338_p8 = scmp.lt.s32.totalorder %s3401_s16, 3 }
  0x12   : > { %p339_p9 = pnand %p2724_p7, %p338_p8 }
  0x13   : > { %s4059_s3 = sld [smem:[#allocation10_spill]] (!%p339_p9)  ;;  %v3403_v3 = vmov (!%p339_p9), 0.0|0.0   ;;  %p388_p10 = scmp.lt.s32.totalorder (!%p339_p9), %s3488_s17, 1  ;;  %vm3404_vm0 = vmmov (!%p339_p9), 0   ;;  %v3405_v11 = vmov (!%p339_p9), 0.0   ;;  %vm453_vm1 = vcmask (!%p339_p9), 261120  }
  0x14   : > { %342 = sbr.rel (%p339_p9) target bundleno = 2027 (0x7eb), region = 56  ;;  %3145 = vmatprep.subr.bf16.mxu0 (!%p339_p9), %v3403_v3  ;;  %3151 = vmatprep.subr.bf16.mxu1 (!%p339_p9), %v3403_v3  ;;  %s4060_s0 = sld [smem:[#allocation8_spill]] (!%p339_p9)  ;;  %vm1390_vm2 = vcmask (!%p339_p9), 64512   ;;  %vm2470_vm3 = vcmask (!%p339_p9), 523264  }
  0x15   : > { %2931 = vmatprep.mubr.msk.f32.mxu0 (!%p339_p9), %vm3404_vm0, %v3405_v11  ;;  %2942 = vmatprep.mubr.msk.f32.mxu1 (!%p339_p9), %vm3404_vm0, %v3405_v11  ;;  %s4061_s2 = sld [smem:[#allocation9_spill]] (!%p339_p9)  ;;  %s3816_s27 = sand.u32 (!%p339_p9), 1, %s3393_s14  }
  0x16   : > { %s2726_s28 = sshll.u32 (!%p339_p9), %s3816_s27, 5  ;;  %s2578_s11 = scalar_lea.sflag (!%p339_p9), [#allocation5], %s3816_s27 }
  0x17   : > { %s3827_s18 = scalar_lea.vmem (!%p339_p9), [#allocation4], %s2726_s28 }
  0x19   : > { %v409_v0 = vld [vmem:[%s4059_s3] sm:$0xff] (!%p339_p9)  ;;  %v410_v1 = vld [vmem:[%s4059_s3 + $0x8] sm:$0xff] (!%p339_p9)  ;;  %v411_v6 = vld [vmem:[%s4059_s3 + $0x10] sm:$0xff] (!%p339_p9) }
  0x1a   : > { %v413_v2 = vld [vmem:[%s4059_s3 + $0x20] sm:$0xff] (!%p339_p9)  ;;  %v3146_v4 = vpack.c.bf16 (!%p339_p9), %v410_v1, %v409_v0  ;;  %v414_v5 = vld [vmem:[%s4059_s3 + $0x28] sm:$0xff] (!%p339_p9)  ;;  %v412_v7 = vld [vmem:[%s4059_s3 + $0x18] sm:$0xff] (!%p339_p9) }
  0x1b   : > { %v3152_v8 = vpack.c.bf16 %v414_v5, %v413_v2  ;;  %v415_v9 = vld [vmem:[%s4059_s3 + $0x30] sm:$0xff]  ;;  %v416_v10 = vld [vmem:[%s4059_s3 + $0x38] sm:$0xff]  ;;  %v3149_v12 = vpack.c.bf16 %v412_v7, %v411_v6  ;;  %s389_s30 = scalar_select %p388_p10, %s3488_s17, 1  ;;  %v417_v14 = vld [vmem:[%s4059_s3 + $0x40] sm:$0xff] }
  0x1c   : > { %3147 = vmatpush3.bf16.msra.mxu0 %v3146_v4  ;;  %v3155_v13 = vpack.c.bf16 %v416_v10, %v415_v9  ;;  %v418_v15 = vld [vmem:[%s4059_s3 + $0x48] sm:$0xff]  ;;  %v421_v16 = vld [vmem:[%s4059_s3 + $0x60] sm:$0xff]  ;;  %v419_v21 = vld [vmem:[%s4059_s3 + $0x50] sm:$0xff] }
  0x1d   : > { %3153 = vmatpush3.bf16.msra.mxu1 %v3152_v8  ;;  %3148 = vmatprep.subr.bf16.mxu0 %v3403_v3  ;;  %s3555_s21 = sshll.u32 %s389_s30, 3  ;;  %v422_v17 = vld [vmem:[%s4059_s3 + $0x68] sm:$0xff]  ;;  %v3158_v19 = vpack.c.bf16 %v418_v15, %v417_v14  ;;  %v420_v22 = vld [vmem:[%s4059_s3 + $0x58] sm:$0xff]  ;;  %v423_v23 = vld [vmem:[%s4059_s3 + $0x70] sm:$0xff] }
  0x1e   : > { %3154 = vmatprep.subr.bf16.mxu1 %v3403_v3  ;;  %s391_s12 = scalar_lea.vmem %s4060_s0, %s3555_s21  ;;  %v3164_v20 = vpack.c.bf16 %v422_v17, %v421_v16  ;;  %v424_v24 = vld [vmem:[%s4059_s3 + $0x78] sm:$0xff]  ;;  %v3161_v25 = vpack.c.bf16 %v420_v22, %v419_v21  ;;  %v2738_v27 = vld [vmem:[%s4059_s3 + $0x80] sm:$0xff]  ;;  %v2739_v28 = vld [vmem:[%s4059_s3 + $0x88] sm:$0xff]  ;;  %s399_s26 = scalar_lea.vmem %s4061_s2, %s3555_s21 }
  0x1f   : > { %v3567_v18 = vld [vmem:[%s391_s12] sm:$0xff]  ;;  %v3167_v26 = vpack.c.bf16 %v424_v24, %v423_v23  ;;  %v2743_v30 = vld [vmem:[%s4059_s3 + $0xa8] sm:$0xff]  ;;  %v3170_v31 = vpack.c.bf16 %v2739_v28, %v2738_v27  ;;  %v2740_v33 = vld [vmem:[%s4059_s3 + $0x90] sm:$0xff]  ;;  %s395_s29 = scalar_lea.vmem %s4044_s1, %s3555_s21  ;;  %s2821_s21 = sshll.u32 %s3488_s17, 7 }
  0x20   : > { %3150 = vmatpush3.bf16.msra.mxu0 %v3149_v12  ;;  %v2742_v29 = vld [vmem:[%s4059_s3 + $0xa0] sm:$0xff]  ;;  %v2741_v34 = vld [vmem:[%s4059_s3 + $0x98] sm:$0xff]  ;;  %v2744_v35 = vld [vmem:[%s4059_s3 + $0xb0] sm:$0xff]  ;;  %s2603_s0 = sshll.u32 %s3827_s18, 4  ;;  %s3960_s0 = int_to_ptr.vmem [resolvable:$true] %s2603_s0 }
  0x21   : > { %3156 = vmatpush3.bf16.msra.mxu1 %v3155_v13  ;;  %3157 = vmatprep.subr.bf16.mxu0 %v3403_v3  ;;  %v3176_v32 = vpack.c.bf16 %v2743_v30, %v2742_v29  ;;  %v2745_v36 = vld [vmem:[%s4059_s3 + $0xb8] sm:$0xff]  ;;  %v3173_v37 = vpack.c.bf16 %v2741_v34, %v2740_v33  ;;  %v2746_v39 = vld [vmem:[%s4059_s3 + $0xc0] sm:$0xff]  ;;  %v2747_v40 = vld [vmem:[%s4059_s3 + $0xc8] sm:$0xff]  ;;  %s3307_s2 = scalar_lea.vmem %s3960_s0, 512 }
  0x22   : > { %3163 = vmatprep.subr.bf16.mxu1 %v3403_v3  ;;  %v3179_v38 = vpack.c.bf16 %v2745_v36, %v2744_v35  ;;  %v2750_v41 = vld [vmem:[%s4059_s3 + $0xe0] sm:$0xff]  ;;  %v2751_v42 = vld [vmem:[%s4059_s3 + $0xe8] sm:$0xff]  ;;  %v3182_v43 = vpack.c.bf16 %v2747_v40, %v2746_v39  ;;  %v2748_v45 = vld [vmem:[%s4059_s3 + $0xd0] sm:$0xff]  ;;  %p3308_p11 = scmp.ne.s32.totalorder %s3960_s0, %s3307_s2 }
  0x23   : > { %2932 = vmatmul.mubr.msk.f32.vlgmr.msra.gmra.mrb[0].mxu0 %vm453_vm1, %v3567_v18  ;;  %v3188_v44 = vpack.c.bf16 %v2751_v42, %v2750_v41  ;;  %v2749_v46 = vld [vmem:[%s4059_s3 + $0xd8] sm:$0xff]  ;;  %v2752_v47 = vld [vmem:[%s4059_s3 + $0xf0] sm:$0xff]  ;;  %v2766_v51 = vld [vmem:[%s4059_s3 + $0x100] sm:$0xff] }
  0x24   : > { %2943 = vmatmul.mubr.msk.f32.vlgmr.msra.gmra.mrb[0].mxu1 %vm453_vm1, %v3567_v18  ;;  %3159 = vmatpush3.bf16.msra.mxu0 %v3158_v19  ;;  %v2753_v48 = vld [vmem:[%s4059_s3 + $0xf8] sm:$0xff]  ;;  %v3185_v49 = vpack.c.bf16 %v2749_v46, %v2748_v45  ;;  %v2767_v52 = vld [vmem:[%s4059_s3 + $0x108] sm:$0xff]  ;;  %v2768_v54 = vld [vmem:[%s4059_s3 + $0x110] sm:$0xff]  ;;  %p3309_p12 = pnand %p3308_p11, %p3505_p5 }
  0x25   : > { %3165 = vmatpush3.bf16.msra.mxu1 %v3164_v20  ;;  %3160 = vmatprep.subr.bf16.mxu0 %v3403_v3  ;;  %v3191_v50 = vpack.c.bf16 %v2753_v48, %v2752_v47  ;;  %v3194_v53 = vpack.c.bf16 %v2767_v52, %v2766_v51  ;;  %v2769_v55 = vld [vmem:[%s4059_s3 + $0x118] sm:$0xff]  ;;  %v2770_v57 = vld [vmem:[%s4059_s3 + $0x120] sm:$0xff]  ;;  %v2771_v58 = vld [vmem:[%s4059_s3 + $0x128] sm:$0xff] }
  0x26   : > { %3166 = vmatprep.subr.bf16.mxu1 %v3403_v3  ;;  %2953 = vmatprep.mubr.msk.f32.mxu0 %vm3404_vm0, %v3405_v11  ;;  %v3197_v56 = vpack.c.bf16 %v2769_v55, %v2768_v54  ;;  %v2774_v59 = vld [vmem:[%s4059_s3 + $0x140] sm:$0xff]  ;;  %v3200_v60 = vpack.c.bf16 %v2771_v58, %v2770_v57  ;;  %v2775_v61 = vld [vmem:[%s4059_s3 + $0x148] sm:$0xff]  ;;  %v2772_v63 = vld [vmem:[%s4059_s3 + $0x130] sm:$0xff]  ;;  %p3310_p13 = pneg %p3309_p12 }
  0x27   : > { %2964 = vmatprep.mubr.msk.f32.mxu1 %vm3404_vm0, %v3405_v11  ;;  %v3206_v62 = vpack.c.bf16 %v2775_v61, %v2774_v59  ;;  %v2773_v0 = vld [vmem:[%s4059_s3 + $0x138] sm:$0xff]  ;;  %v2776_v1 = vld [vmem:[%s4059_s3 + $0x150] sm:$0xff]  ;;  %v2778_v6 = vld [vmem:[%s4059_s3 + $0x160] sm:$0xff] }
  0x28   : > { %3162 = vmatpush3.bf16.msra.mxu0 %v3161_v25  ;;  %v3203_v2 = vpack.c.bf16 %v2773_v0, %v2772_v63  ;;  %v2777_v4 = vld [vmem:[%s4059_s3 + $0x158] sm:$0xff]  ;;  %v2779_v7 = vld [vmem:[%s4059_s3 + $0x168] sm:$0xff]  ;;  %v2780_v9 = vld [vmem:[%s4059_s3 + $0x170] sm:$0xff] }
  0x29   : > { %3168 = vmatpush3.bf16.msra.mxu1 %v3167_v26  ;;  %3169 = vmatprep.subr.bf16.mxu0 %v3403_v3  ;;  %v3209_v5 = vpack.c.bf16 %v2777_v4, %v2776_v1  ;;  %v3212_v8 = vpack.c.bf16 %v2779_v7, %v2778_v6  ;;  %v2781_v10 = vld [vmem:[%s4059_s3 + $0x178] sm:$0xff]  ;;  %v2758_v22 = vld [vmem:[%s4047_s4 + $0x4] ss:$0 sm:$0xff]  ;;  %v2759_v24 = vld [vmem:[%s4047_s4 + $0x5] ss:$0 sm:$0xff]  ;;  %s3407_s3 = smov [#allocation4]  }
  0x2a   : > { %3175 = vmatprep.subr.bf16.mxu1 %v3403_v3  ;;  %v3215_v12 = vpack.c.bf16 %v2781_v10, %v2780_v9  ;;  %v2730_v25 = vld [vmem:[%s4047_s4] ss:$0 sm:$0xff]  ;;  %v2760_v33 = vld [vmem:[%s4047_s4 + $0x6] ss:$0 sm:$0xff]  ;;  %v2761_v34 = vld [vmem:[%s4047_s4 + $0x7] ss:$0 sm:$0xff] }
  0x2b   : > { %2954 = vmatmul.mubr.msk.f32.vlgmr.msra.gmra.mrb[2].mxu0 %vm453_vm1, %v3567_v18  ;;  %v2733_v41 = vld [vmem:[%s4047_s4 + $0x3] ss:$0 sm:$0xff]  ;;  %v2786_v46 = vld [vmem:[%s4047_s4 + $0x8] ss:$0 sm:$0xff]  ;;  %s3311_s12 = sshll.u32 %s3407_s3, 4  ;;  %s3312_s12 = int_to_ptr.vmem [resolvable:$false] %s3311_s12 }
  0x2c   : > { %2965 = vmatmul.mubr.msk.f32.vlgmr.msra.gmra.mrb[2].mxu1 %vm453_vm1, %v3567_v18  ;;  %3171 = vmatpush3.bf16.msra.mxu0 %v3170_v31  ;;  %v1389_v58 = vld [vmem:[%s399_s26] sm:$0xff]  ;;  %s3313_s30 = scalar_lea.vmem %s3312_s12, 1024  ;;  %p3314_p0 = scmp.lt.s32.totalorder %s3960_s0, %s3312_s12 }
  0x2d   : > { %3177 = vmatpush3.bf16.msra.mxu1 %v3176_v32  ;;  %3172 = vmatprep.subr.bf16.mxu0 %v3403_v3  ;;  %v2731_v32 = vld [vmem:[%s4047_s4 + $0x1] ss:$0 sm:$0xff]  ;;  %p3315_p1 = scmp.lt.s32.totalorder %s3313_s30, %s3307_s2 }
  0x2e   : > { %3178 = vmatprep.subr.bf16.mxu1 %v3403_v3  ;;  %2975 = vmatprep.mubr.msk.f32.mxu0 %vm3404_vm0, %v3405_v11 }
  0x2f   : > { %2986 = vmatprep.mubr.msk.f32.mxu1 %vm3404_vm0, %v3405_v11  ;;  %p3316_p2 = por %p3315_p1, %p3314_p0 }
  0x30   : > { %3174 = vmatpush3.bf16.msra.mxu0 %v3173_v37  ;;  %v2732_v37 = vld [vmem:[%s4047_s4 + $0x2] ss:$0 sm:$0xff] }
  0x31   : > { %3180 = vmatpush3.bf16.msra.mxu1 %v3179_v38  ;;  %3181 = vmatprep.subr.bf16.mxu0 %v3403_v3  ;;  %p3317_p3 = pnand %p3316_p2, %p3310_p13 }
  0x32   : > { %3187 = vmatprep.subr.bf16.mxu1 %v3403_v3 }
  0x33   : > { %2976 = vmatmul.mubr.msk.f32.vlgmr.msra.gmra.mrb[4].mxu0 %vm453_vm1, %v3567_v18 }
  0x34   : > { %2987 = vmatmul.mubr.msk.f32.vlgmr.msra.gmra.mrb[4].mxu1 %vm453_vm1, %v3567_v18  ;;  %3183 = vmatpush3.bf16.msra.mxu0 %v3182_v43 }
  0x35   : > { %3189 = vmatpush3.bf16.msra.mxu1 %v3188_v44  ;;  %3184 = vmatprep.subr.bf16.mxu0 %v3403_v3 }
  0x36   : > { %3190 = vmatprep.subr.bf16.mxu1 %v3403_v3  ;;  %2997 = vmatprep.mubr.msk.f32.mxu0 %vm3404_vm0, %v3405_v11 }
  0x37   : > { %3008 = vmatprep.mubr.msk.f32.mxu1 %vm3404_vm0, %v3405_v11 }
  0x38   : > { %3186 = vmatpush3.bf16.msra.mxu0 %v3185_v49 }
  0x39   : > { %3192 = vmatpush3.bf16.msra.mxu1 %v3191_v50  ;;  %3193 = vmatprep.subr.bf16.mxu0 %v3403_v3  ;;  %v2787_v50 = vld [vmem:[%s4047_s4 + $0x9] ss:$0 sm:$0xff] }
  0x3a   : > { %3199 = vmatprep.subr.bf16.mxu1 %v3403_v3 }
  0x3b   : > { %2998 = vmatmul.mubr.msk.f32.vlgmr.msra.gmra.mrb[6].mxu0 %vm453_vm1, %v3567_v18 }
  0x3c   : > { %3009 = vmatmul.mubr.msk.f32.vlgmr.msra.gmra.mrb[6].mxu1 %vm453_vm1, %v3567_v18  ;;  %3195 = vmatpush3.bf16.msra.mxu0 %v3194_v53 }
  0x3d   : > { %3196 = vmatprep.subr.bf16.mxu0 %v3403_v3  ;;  %3019 = vmatprep.mubr.msk.f32.mxu0 %vm3404_vm0, %v3405_v11 }
  0x3e   : > { %3030 = vmatprep.mubr.msk.f32.mxu1 %vm3404_vm0, %v3405_v11  ;;  %3201 = vmatpush3.bf16.msra.mxu1 %v3200_v60 }
  0x3f   : > { %3202 = vmatprep.subr.bf16.mxu1 %v3403_v3 }
  0x40   : > { %3198 = vmatpush3.bf16.msra.mxu0 %v3197_v56 }
  0x41   : > { %3205 = vmatprep.subr.bf16.mxu0 %v3403_v3 }
  0x42   : > { %3204 = vmatpush3.bf16.msra.mxu1 %v3203_v2 }
  0x43   : > { %3020 = vmatmul.mubr.msk.f32.vlgmr.msra.gmra.mrb[8].mxu0 %vm453_vm1, %v3567_v18  ;;  %3211 = vmatprep.subr.bf16.mxu1 %v3403_v3 }
  0x44   : > { %3207 = vmatpush3.bf16.msra.mxu0 %v3206_v62  ;;  %3041 = vmatprep.mubr.msk.f32.mxu0 %vm3404_vm0, %v3405_v11 }
  0x45   : > { %3208 = vmatprep.subr.bf16.mxu0 %v3403_v3  ;;  %3031 = vmatmul.mubr.msk.f32.vlgmr.msra.gmra.mrb[8].mxu1 %vm453_vm1, %v3567_v18 }
  0x46   : > { %3213 = vmatpush3.bf16.msra.mxu1 %v3212_v8  ;;  %3052 = vmatprep.mubr.msk.f32.mxu1 %vm3404_vm0, %v3405_v11 }
  0x47   : > { %3214 = vmatprep.subr.bf16.mxu1 %v3403_v3 }
  0x48   : > { %3210 = vmatpush3.bf16.msra.mxu0 %v3209_v5 }
  0x49   : > { %3055 = vmatprep.subr.mxu0 %v3405_v11 }
  0x4a   : > { %3216 = vmatpush3.bf16.msra.mxu1 %v3215_v12 }
  0x4b   : > { %3042 = vmatmul.mubr.msk.f32.vlgmr.msra.gmra.mrb[10].mxu0 %vm453_vm1, %v3567_v18  ;;  %3070 = vmatprep.subr.mxu1 %v3405_v11 }
  0x4c   : > { %3057 = vmatprep.mubr.msk.f32.mxu0 %vm3404_vm0, %v3405_v11 }
  0x4d   : > { %3053 = vmatmul.mubr.msk.f32.vlgmr.msra.gmra.mrb[10].mxu1 %vm453_vm1, %v3567_v18 }
  0x4e   : > { %3072 = vmatprep.mubr.msk.f32.mxu1 %vm3404_vm0, %v3405_v11 }
  0xf6   : > { %v523_v13 = vpop.f32.mrb[0].mxu0 }
  0xf7   : > { %v2933_v14 = vpop.f32.mrb[1].mxu0  ;;  %v593_v15 = vpop.f32.mrb[0].mxu1  ;;  %v524_v31 = vadd.f32 %v2730_v25, %v523_v13 }
  0xf8   : > { %v2944_v16 = vpop.f32.mrb[1].mxu1  ;;  %v594_v35 = vadd.f32 %v2731_v32, %v593_v15 }
  0xfe   : > { %v663_v17 = vpop.f32.mrb[2].mxu0 }
  0xff   : > { %v2955_v19 = vpop.f32.mrb[3].mxu0  ;;  %v733_v20 = vpop.f32.mrb[2].mxu1  ;;  %v664_v44 = vadd.f32 %v2732_v37, %v663_v17  ;;  %v2788_v37 = vld [vmem:[%s4047_s4 + $0xa] ss:$0 sm:$0xff] }
 0x100   : > { %v2966_v21 = vpop.f32.mrb[3].mxu1  ;;  %v734_v45 = vadd.f32 %v2733_v41, %v733_v20 }
 0x106   : > { %v849_v23 = vpop.f32.mrb[4].mxu0 }
 0x107   : > { %v850_v26 = vadd.f32 %v2758_v22, %v849_v23  ;;  %v2977_v27 = vpop.f32.mrb[5].mxu0  ;;  %v919_v28 = vpop.f32.mrb[4].mxu1 }
 0x108   : > { %v2988_v29 = vpop.f32.mrb[5].mxu1  ;;  %v920_v30 = vadd.f32 %v2759_v24, %v919_v28 }
 0x109   : > { %3056 = vmatpush3.xpose.msk.msra.mxu0 %vm1390_vm2, %v850_v26 }
 0x10a   : > { %3060 = vmatprep.subr.mxu0 %v3405_v11 }
 0x10c   : > { %3058 = vmatmul.mubr.msk.f32.vlgmr.msra.gmra.mrb[12].mxu0 %vm1390_vm2, %v524_v31 }
 0x10d   : > { %3061 = vmatpush3.xpose.msk.msra.mxu0 %vm1390_vm2, %v920_v30  ;;  %3062 = vmatprep.mubr.msk.f32.mxu0 %vm3404_vm0, %v3405_v11 }
 0x10e   : > { %v989_v36 = vpop.f32.mrb[6].mxu0  ;;  %3065 = vmatprep.subr.mxu0 %v3405_v11 }
 0x10f   : > { %v990_v38 = vadd.f32 %v2760_v33, %v989_v36  ;;  %v1059_v39 = vpop.f32.mrb[6].mxu1  ;;  %v2999_v40 = vpop.f32.mrb[7].mxu0 }
 0x110   : > { %v1060_v42 = vadd.f32 %v2761_v34, %v1059_v39  ;;  %3063 = vmatmul.mubr.msk.f32.vlgmr.msra.gmra.mrb[14].mxu0 %vm1390_vm2, %v594_v35  ;;  %v3010_v43 = vpop.f32.mrb[7].mxu1 }
 0x111   : > { %3066 = vmatpush3.xpose.msk.msra.mxu0 %vm1390_vm2, %v990_v38  ;;  %3067 = vmatprep.mubr.msk.f32.mxu0 %vm3404_vm0, %v3405_v11 }
 0x112   : > { %3071 = vmatpush3.xpose.msk.msra.mxu1 %vm1390_vm2, %v1060_v42  ;;  %3075 = vmatprep.subr.mxu0 %v3405_v11  ;;  %v2789_v42 = vld [vmem:[%s4047_s4 + $0xb] ss:$0 sm:$0xff] }
 0x113   : > { %3080 = vmatprep.subr.mxu1 %v3405_v11 }
 0x114   : > { %3068 = vmatmul.mubr.msk.f32.vlgmr.msra.gmra.mrb[16].mxu0 %vm1390_vm2, %v664_v44 }
 0x115   : > { %3073 = vmatmul.mubr.msk.f32.vlgmr.msra.gmra.mrb[12].mxu1 %vm1390_vm2, %v734_v45  ;;  %3077 = vmatprep.mubr.msk.f32.mxu0 %vm3404_vm0, %v3405_v11 }
 0x116   : > { %3082 = vmatprep.mubr.msk.f32.mxu1 %vm3404_vm0, %v3405_v11  ;;  %v1175_v47 = vpop.f32.mrb[8].mxu0 }
 0x117   : > { %v1176_v48 = vadd.f32 %v2786_v46, %v1175_v47  ;;  %v3021_v49 = vpop.f32.mrb[9].mxu0 }
 0x118   : > { %v1245_v51 = vpop.f32.mrb[8].mxu1 }
 0x119   : > { %3076 = vmatpush3.msra.mxu0 %v1176_v48  ;;  %v1246_v52 = vadd.f32 %v2787_v50, %v1245_v51  ;;  %v3032_v53 = vpop.f32.mrb[9].mxu1  ;;  %v2035_v50 = vld [vmem:[%s4048_s5] sm:$0xff]  ;;  %v2036_v51 = vld [vmem:[%s4048_s5 + $0x8] sm:$0xff] }
 0x11a   : > { %3085 = vmatprep.subr.mxu0 %v3405_v11 }
 0x11b   : > { %3081 = vmatpush3.msra.mxu1 %v1246_v52  ;;  %v2037_v52 = vld [vmem:[%s4048_s5 + $0x10] sm:$0xff] }
 0x11c   : > { %3090 = vmatprep.subr.mxu1 %v3405_v11 }
 0x11e   : > { %v3798_v54 = vpop.f32.mrb[10].mxu0 }
 0x11f   : > { %v3043_v55 = vpop.f32.mrb[11].mxu0  ;;  %v1316_v41 = vadd.f32 %v2788_v37, %v3798_v54 }
 0x120   : > { %v3801_v56 = vpop.f32.mrb[10].mxu1  ;;  %v2038_v55 = vld [vmem:[%s4048_s5 + $0x18] sm:$0xff] }
 0x121   : > { %v3054_v57 = vpop.f32.mrb[11].mxu1  ;;  %v1386_v45 = vadd.f32 %v2789_v42, %v3801_v56 }
 0x1df   : > { %v1463_v59 = vpop.f32.mrb[12].mxu0 }
 0x1e0   : > { %v1464_v60 = vadd.f32 %v1463_v59, %v1389_v58  ;;  %v3059_v61 = vpop.f32.mrb[13].mxu0 }
 0x1e2   : > { %v1695_v62 = vsel %vm1390_vm2, %v1464_v60, -inf }
 0x1e3   : > { %1696 = vmax.xlane.f32.xlu0 %v1695_v62  ;;  %v1539_v63 = vpop.f32.mrb[14].mxu0  ;;  %v3406_v62 = vmov 0  }
 0x1e4   : > { %v1540_v0 = vadd.f32 %v1539_v63, %v1389_v58  ;;  %v3064_v1 = vpop.f32.mrb[15].mxu0  ;;  %3286 = vset.pattern.permute.xlu0 %v3406_v62 }
 0x1e6   : > { %v1698_v2 = vsel %vm1390_vm2, %v1540_v0, -inf }
 0x1e7   : > { %1699 = vmax.xlane.f32.xlu0 %v1698_v2  ;;  %v1615_v4 = vpop.f32.mrb[16].mxu0 }
 0x1e8   : > { %v1691_v5 = vpop.f32.mrb[12].mxu1  ;;  %v1616_v6 = vadd.f32 %v1615_v4, %v1389_v58  ;;  %v3069_v7 = vpop.f32.mrb[17].mxu0 }
 0x1e9   : > { %v3074_v8 = vpop.f32.mrb[13].mxu1  ;;  %v1692_v9 = vadd.f32 %v1691_v5, %v1389_v58 }
 0x1ea   : > { %v1701_v10 = vsel %vm1390_vm2, %v1616_v6, -inf }
 0x1eb   : > { %1702 = vmax.xlane.f32.xlu1 %v1701_v10  ;;  %v1704_v12 = vsel %vm1390_vm2, %v1692_v9, -inf }
 0x1ef   : > { %1705 = vmax.xlane.f32.xlu1 %v1704_v12 }
 0x270   : > { %v1697_v13 = vpop.xlane.xlu0 %1696 }
 0x271   : > { %v1707_v14 = vsub.f32 %v1464_v60, %v1697_v13 }
 0x273   : > { %v1711_v15 = vmul.f32 1.442695, %v1707_v14 }
 0x274   : > { %v1700_v16 = vpop.xlane.xlu0 %1699 }
 0x275   : > { %3287 = vpow2.f32 %v1711_v15  ;;  %v1708_v17 = vsub.f32 %v1540_v0, %v1700_v16 }
 0x277   : > { %v1713_v19 = vmul.f32 1.442695, %v1708_v17 }
 0x278   : > { %v1703_v20 = vpop.xlane.xlu1 %1702 }
 0x279   : > { %3289 = vpow2.f32 %v1713_v19  ;;  %v1709_v21 = vsub.f32 %v1616_v6, %v1703_v20 }
 0x27b   : > { %v1715_v22 = vmul.f32 1.442695, %v1709_v21 }
 0x27c   : > { %v1706_v23 = vpop.xlane.xlu1 %1705 }
 0x27d   : > { %3291 = vpow2.f32 %v1715_v22  ;;  %v1710_v24 = vsub.f32 %v1692_v9, %v1706_v23  ;;  %v401_v22 = vld [vmem:[%s395_s29] sm:$0xff]  ;;  %s3957_s29 = scalar_lea.hbm %s4053_s10, %s2821_s21 }
 0x27e   : > { %v2376_v23 = vld [vmem:[%s4049_s6] sm:$0xff] }
 0x27f   : > { %v3288_v25 = vpop.eup %3287  ;;  %v1717_v26 = vmul.f32 1.442695, %v1710_v24  ;;  %v2378_v24 = vld [vmem:[%s4049_s6 + $0x10] sm:$0xff] }
 0x280   : > { %v1719_v27 = vsel %vm1390_vm2, %v3288_v25, 0.0 }
 0x281   : > { %3293 = vpow2.f32 %v1717_v26  ;;  %1720 = vadd.xlane.f32.xlu0 %v1719_v27  ;;  %v2379_v26 = vld [vmem:[%s4049_s6 + $0x18] sm:$0xff] }
 0x282   : > { %v3221_v27 = vpack.c.bf16 %v2379_v26, %v2378_v24 }
 0x283   : > { %v3290_v28 = vpop.eup %3289 }
 0x284   : > { %v1722_v29 = vsel %vm1390_vm2, %v3290_v28, 0.0 }
 0x285   : > { %1723 = vadd.xlane.f32.xlu1 %v1722_v29  ;;  %v2459_v29 = vld [vmem:[%s4050_s7 + $0x8] sm:$0xff] }
 0x287   : > { %v3292_v30 = vpop.eup %3291 }
 0x288   : > { %v1725_v31 = vsel %vm1390_vm2, %v3292_v30, 0.0 }
 0x289   : > { %1726 = vadd.xlane.f32.xlu0 %v1725_v31 }
 0x28b   : > { %v3294_v32 = vpop.eup %3293 }
 0x28c   : > { %v1728_v33 = vsel %vm1390_vm2, %v3294_v32, 0.0 }
 0x28d   : > { %1729 = vadd.xlane.f32.xlu1 %v1728_v33 }
 0x30e   : > { %v1721_v34 = vpop.xlane.xlu0 %1720 }
 0x30f   : > { %3295 = vrcp.f32 %v1721_v34  ;;  %v2462_v34 = vld [vmem:[%s4050_s7 + $0x20] sm:$0xff] }
 0x312   : > { %v1724_v35 = vpop.xlane.xlu1 %1723 }
 0x313   : > { %3297 = vrcp.f32 %v1724_v35  ;;  %v2463_v35 = vld [vmem:[%s4050_s7 + $0x28] sm:$0xff] }
 0x316   : > { %v1727_v36 = vpop.xlane.xlu0 %1726 }
 0x317   : > { %3299 = vrcp.f32 %v1727_v36  ;;  %v3230_v36 = vpack.c.bf16 %v2463_v35, %v2462_v34 }
 0x319   : > { %v3296_v38 = vpop.eup %3295 }
 0x31a   : > { %v1735_v39 = vmul.f32 %v3296_v38, %v3288_v25  ;;  %v1730_v40 = vpop.xlane.xlu1 %1729 }
 0x31b   : > { %3301 = vrcp.f32 %v1730_v40 }
 0x31c   : > { %3078 = vmatmul.mubr.msk.f32.vlgmr.msra.gmra.mrb[18].mxu0 %vm1390_vm2, %v1735_v39  ;;  %1739 = vst.msk [vmem:[%s3827_s18] sm:$0xff] %vm1390_vm2, %v1735_v39 }
 0x31d   : > { %v3298_v43 = vpop.eup %3297  ;;  %3086 = vmatpush3.msra.mxu0 %v1316_v41  ;;  %3087 = vmatprep.mubr.msk.f32.mxu0 %vm3404_vm0, %v3405_v11 }
 0x31e   : > { %v1736_v44 = vmul.f32 %v3298_v43, %v3290_v28  ;;  %3095 = vmatprep.subr.mxu0 %v3405_v11  ;;  %v2458_v28 = vld [vmem:[%s4050_s7] sm:$0xff] }
 0x31f   : > { %v3224_v31 = vpack.c.bf16 %v2459_v29, %v2458_v28 }
 0x320   : > { %3083 = vmatmul.mubr.msk.f32.vlgmr.msra.gmra.mrb[14].mxu1 %vm1390_vm2, %v1736_v44  ;;  %1740 = vst.msk [vmem:[%s3827_s18 + $0x8] sm:$0xff] %vm1390_vm2, %v1736_v44 }
 0x321   : > { %v3300_v46 = vpop.eup %3299  ;;  %3091 = vmatpush3.msra.mxu1 %v1386_v45  ;;  %3092 = vmatprep.mubr.msk.f32.mxu1 %vm3404_vm0, %v3405_v11 }
 0x322   : > { %v1737_v47 = vmul.f32 %v3300_v46, %v3292_v30  ;;  %3100 = vmatprep.subr.mxu1 %v3405_v11  ;;  %v2460_v30 = vld [vmem:[%s4050_s7 + $0x10] sm:$0xff]  ;;  %v2811_v46 = vld [vmem:[%s4051_s8 + $0x3] ss:$0 sm:$0xff] }
 0x324   : > { %3088 = vmatmul.mubr.msk.f32.vlgmr.msra.gmra.mrb[20].mxu0 %vm1390_vm2, %v1737_v47  ;;  %1741 = vst.msk [vmem:[%s3827_s18 + $0x10] sm:$0xff] %vm1390_vm2, %v1737_v47 }
 0x325   : > { %v3302_v48 = vpop.eup %3301  ;;  %3097 = vmatprep.mubr.msk.f32.mxu0 %vm3404_vm0, %v3405_v11  ;;  %3096 = vmatpush3.msra.mxu0 %v2035_v50 }
 0x326   : > { %v1738_v49 = vmul.f32 %v3302_v48, %v3294_v32  ;;  %3105 = vmatprep.subr.mxu0 %v3405_v11  ;;  %v2461_v32 = vld [vmem:[%s4050_s7 + $0x18] sm:$0xff]  ;;  %v2812_v48 = vld [vmem:[%s4051_s8 + $0x4] ss:$0 sm:$0xff] }
 0x327   : > { %v3227_v33 = vpack.c.bf16 %v2461_v32, %v2460_v30 }
 0x328   : > { %3093 = vmatmul.mubr.msk.f32.vlgmr.msra.gmra.mrb[16].mxu1 %vm1390_vm2, %v1738_v49  ;;  %1742 = vst.msk [vmem:[%s3827_s18 + $0x18] sm:$0xff] %vm1390_vm2, %v1738_v49 }
 0x329   : > { %3102 = vmatprep.mubr.msk.f32.mxu1 %vm3404_vm0, %v3405_v11  ;;  %3101 = vmatpush3.msra.mxu1 %v2036_v51 }
 0x32a   : > { %3110 = vmatprep.subr.mxu1 %v3405_v11 }
 0x3ef   : > { %v1812_v53 = vpop.f32.mrb[18].mxu0 }
 0x3f0   : > { %v3079_v54 = vpop.f32.mrb[19].mxu0  ;;  %3098 = vmatmul.mubr.msk.f32.vlgmr.msra.gmra.mrb[22].mxu0 %vm1390_vm2, %v1812_v53  ;;  %v2465_v53 = vld [vmem:[%s4050_s7 + $0x38] sm:$0xff] }
 0x3f1   : > { %3106 = vmatpush3.msra.mxu0 %v2037_v52  ;;  %3107 = vmatprep.mubr.msk.f32.mxu0 %vm3404_vm0, %v3405_v11  ;;  %v2464_v52 = vld [vmem:[%s4050_s7 + $0x30] sm:$0xff] }
 0x3f2   : > { %3217 = vmatprep.subr.bf16.mxu0 %v3403_v3  ;;  %v3233_v54 = vpack.c.bf16 %v2465_v53, %v2464_v52 }
 0x3f3   : > { %v1885_v56 = vpop.f32.mrb[14].mxu1 }
 0x3f4   : > { %v3084_v57 = vpop.f32.mrb[15].mxu1  ;;  %3103 = vmatmul.mubr.msk.f32.vlgmr.msra.gmra.mrb[18].mxu1 %vm1390_vm2, %v1885_v56 }
 0x3f5   : > { %3111 = vmatpush3.msra.mxu1 %v2038_v55  ;;  %3112 = vmatprep.mubr.msk.f32.mxu1 %vm3404_vm0, %v3405_v11  ;;  %v2813_v55 = vld [vmem:[%s4051_s8 + $0x1] ss:$0 sm:$0xff] }
 0x3f6   : > { %3223 = vmatprep.subr.bf16.mxu1 %v3403_v3 }
 0x3f7   : > { %v1958_v58 = vpop.f32.mrb[20].mxu0 }
 0x3f8   : > { %v3089_v59 = vpop.f32.mrb[21].mxu0  ;;  %3108 = vmatmul.mubr.msk.f32.vlgmr.msra.gmra.mrb[24].mxu0 %vm1390_vm2, %v1958_v58 }
 0x3f9   : > { %3123 = vmatprep.mubr.msk.f32.mxu0 %vm3404_vm0, %v3405_v11 }
 0x3fb   : > { %v2031_v60 = vpop.f32.mrb[16].mxu1 }
 0x3fc   : > { %v3094_v61 = vpop.f32.mrb[17].mxu1  ;;  %3113 = vmatmul.mubr.msk.f32.vlgmr.msra.gmra.mrb[20].mxu1 %vm1390_vm2, %v2031_v60  ;;  %v2815_v60 = vld [vmem:[%s4051_s8 + $0x2] ss:$0 sm:$0xff] }
 0x3fd   : > { %3142 = vmatprep.mubr.msk.f32.mxu1 %vm3404_vm0, %v3405_v11  ;;  %v2810_v11 = vld [vmem:[%s4051_s8] ss:$0 sm:$0xff]  ;;  %3225 = vmatpush3.bf16.msra.mxu1 %v3224_v31 }
 0x3fe   : > { %3226 = vmatprep.subr.bf16.mxu1 %v3403_v3 }
 0x401   : > { %3228 = vmatpush3.bf16.msra.mxu1 %v3227_v33 }
 0x402   : > { %3229 = vmatprep.subr.bf16.mxu1 %v3403_v3 }
 0x405   : > { %3231 = vmatpush3.bf16.msra.mxu1 %v3230_v36 }
 0x406   : > { %3232 = vmatprep.subr.bf16.mxu1 %v3403_v3 }
 0x409   : > { %3234 = vmatpush3.bf16.msra.mxu1 %v3233_v54 }
 0x4c3   : > { %v2108_v63 = vpop.f32.mrb[22].mxu0 }
 0x4c4   : > { %v3099_v0 = vpop.f32.mrb[23].mxu0  ;;  %v2331_v2 = vsel %vm453_vm1, %v2108_v63, 0.0 }
 0x4c7   : > { %v2181_v1 = vpop.f32.mrb[18].mxu1 }
 0x4c8   : > { %v2332_v4 = vsel %vm453_vm1, %v2181_v1, 0.0  ;;  %v3104_v5 = vpop.f32.mrb[19].mxu1 }
 0x4c9   : > { %v2333_v6 = vadd.f32 %v2332_v4, %v2331_v2 }
 0x4cb   : > { %v2254_v7 = vpop.f32.mrb[24].mxu0 }
 0x4cc   : > { %v2334_v8 = vsel %vm453_vm1, %v2254_v7, 0.0  ;;  %v3109_v9 = vpop.f32.mrb[25].mxu0 }
 0x4cd   : > { %v2335_v10 = vadd.f32 %v2334_v8, %v2333_v6 }
 0x4cf   : > { %v2327_v12 = vpop.f32.mrb[20].mxu1 }
 0x4d0   : > { %v2336_v13 = vsel %vm453_vm1, %v2327_v12, 0.0  ;;  %v3114_v14 = vpop.f32.mrb[21].mxu1 }
 0x4d1   : > { %v2337_v15 = vadd.f32 %v2336_v13, %v2335_v10 }
 0x4d3   : > { %v2342_v16 = vadd.f32 %v2810_v11, %v2337_v15 }
 0x4d5   : > { %v2343_v17 = vadd.f32 %v2342_v16, %v3567_v18  ;;  %v2377_v18 = vld [vmem:[%s4049_s6 + $0x8] sm:$0xff] }
 0x4d6   : > { %v3218_v25 = vpack.c.bf16 %v2377_v18, %v2376_v23 }
 0x4d7   : > { %v2344_v19 = vsel %vm453_vm1, %v2343_v17, 0.0  ;;  %v2349_v20 = vmul.f32 %v2343_v17, %v2343_v17 }
 0x4d8   : > { %2345 = vadd.xlane.f32.xlu0 %v2344_v19  ;;  %3219 = vmatpush3.bf16.msra.mxu0 %v3218_v25 }
 0x4d9   : > { %v2350_v21 = vsel %vm453_vm1, %v2349_v20, 0.0  ;;  %3220 = vmatprep.subr.bf16.mxu0 %v3403_v3 }
 0x4da   : > { %2351 = vadd.xlane.f32.xlu1 %v2350_v21 }
 0x4dc   : > { %3222 = vmatpush3.bf16.msra.mxu0 %v3221_v27 }
 0x4ee   : > { %2372 = vperm.xlu0 %3286, %v401_v22  }
 0x565   : > { %v2346_v37 = vpop.xlane.xlu0 %2345 }
 0x566   : > { %v2348_v38 = vmul.f32 0.03125, %v2346_v37 }
 0x567   : > { %v2352_v39 = vpop.xlane.xlu1 %2351 }
 0x568   : > { %v2354_v40 = vmul.f32 %v2348_v38, %v2348_v38  ;;  %v2353_v41 = vmul.f32 0.03125, %v2352_v39  ;;  %v2356_v44 = vsub.f32 %v2343_v17, %v2348_v38 }
 0x56a   : > { %v2355_v42 = vsub.f32 %v2353_v41, %v2354_v40 }
 0x56c   : > { %v2357_v43 = vadd.f32 1e-05, %v2355_v42 }
 0x56d   : > { %v3933_v49 = vpop.permute.xlu0 %2372 }
 0x56e   : > { %3303 = vrsqrt.f32 %v2357_v43 }
 0x578   : > { %v3304_v45 = vpop.eup %3303 }
 0x579   : > { %v2359_v47 = vmul.f32 %v3304_v45, %v2356_v44 }
 0x57b   : > { %v2364_v3 = vmul.f32 %v2811_v46, %v2359_v47 }
 0x57d   : > { %v2369_v50 = vadd.f32 %v2812_v48, %v2364_v3 }
 0x57f   : > { %v2375_v51 = vmul.f32 %v3933_v49, %v2369_v50 }
 0x581   : > { %3124 = vmatmul.mubr.msk.f32.vlgmr.msra.gmra.mrb[26].mxu0 %vm453_vm1, %v2375_v51 }
 0x654   : > { %v2453_v56 = vpop.f32.mrb[26].mxu0 }
 0x655   : > { %v2454_v57 = vadd.f32 %v2813_v55, %v2453_v56  ;;  %v3125_v58 = vpop.f32.mrb[27].mxu0 }
 0x657   : > { %v2457_v59 = vmax.f32 %v2454_v57, 0.0 }
 0x659   : > { %3143 = vmatmul.mubr.msk.f32.vlgmr.msra.gmra.mrb[22].mxu1 %vm2470_vm3, %v2457_v59 }
 0x72c   : > { %v2540_v61 = vpop.f32.mrb[22].mxu1 }
 0x72d   : > { %v2541_v62 = vadd.f32 %v2815_v60, %v2540_v61  ;;  %v3144_v63 = vpop.f32.mrb[23].mxu1 }
 0x72f   : > { %v2544_v0 = vadd.f32 %v2541_v62, %v2375_v51 }
 0x731   : > { %v2545_v1 = vsel %vm453_vm1, %v2544_v0, 0.0  ;;  %v2549_v2 = vmul.f32 %v2544_v0, %v2544_v0 }
 0x732   : > { %2546 = vadd.xlane.f32.xlu1 %v2545_v1 }
 0x733   : > { %v2550_v4 = vsel %vm453_vm1, %v2549_v2, 0.0 }
 0x736   : > { %2551 = vadd.xlane.f32.xlu1 %v2550_v4 }
 0x737   : > { %3320 = shalt.err (!%p3317_p3)
}
 0x738   : > { %s3321_s18 = scalar_lea.hbm %s3957_s29, 512  ;;  %s3325_s26 = scalar_lea.hbm %s4053_s10, 1024 }
 0x739   : > { %p3322_p4 = scmp.ne.s32.totalorder %s3957_s29, %s3321_s18  ;;  %p3326_p9 = scmp.lt.u32.totalorder %s3957_s29, %s4053_s10 }
 0x73a   : > { %p3327_p10 = scmp.lt.u32.totalorder %s3325_s26, %s3321_s18  ;;  %p3329_p12 = scmp.lt.u32.totalorder %s3321_s18, %s3957_s29 }
 0x73b   : > { %p3323_p7 = pnand %p3322_p4, %p3505_p5 }
 0x73c   : > { %p3328_p11 = por %p3327_p10, %p3326_p9 }
 0x73d   : > { %p3324_p8 = pneg %p3323_p7 }
 0x73e   : > { %p3330_p13 = por %p3329_p12, %p3328_p11 }
 0x740   : > { %p3331_p0 = pnand %p3330_p13, %p3324_p8 }
 0x742   : > { %3334 = shalt.err (!%p3331_p0)
}
 0x743   : > { %s3408_s2 = smov 128   ;;  %s3409_s12 = smov 256   ;;  %v2817_v14 = vld [vmem:[%s4051_s8 + $0x5] ss:$0 sm:$0xff]  ;;  %v2818_v16 = vld [vmem:[%s4051_s8 + $0x6] ss:$0 sm:$0xff] }
 0x744   : > { %s3410_s30 = smov 8   ;;  %s2725_s18 = sshll.u32 %s3816_s27, 3 }
 0x745   : > { %3236 = dma.vmem_to_hbm [thread:$0]  (%p3505_p5), %s3960_s0, 512, %s3957_s29, %s2578_s11, %s3408_s2, %s3409_s12, %s3410_s30  }
 0x746   : > { %s380_s11 = scalar_lea.vmem [#allocation2], %s2725_s18  ;;  %s3999_s2 = scalar_lea.hbm %s4052_s9, %s2821_s21 }
 0x747   : > { %s2591_s26 = sshll.u32 %s380_s11, 4  ;;  %s2573_s12 = scalar_lea.sflag [#allocation3], %s3816_s27  ;;  %s4001_s26 = int_to_ptr.vmem [resolvable:$true] %s2591_s26 }
 0x748   : > { %s3335_s30 = scalar_lea.vmem %s4001_s26, 128  ;;  %s3411_s18 = smov [#allocation2]  }
 0x749   : > { %p3336_p1 = scmp.ne.s32.totalorder %s4001_s26, %s3335_s30  ;;  %s3339_s17 = sshll.u32 %s3411_s18, 4  ;;  %s3340_s17 = int_to_ptr.vmem [resolvable:$false] %s3339_s17 }
 0x74a   : > { %s3341_s20 = scalar_lea.vmem %s3340_s17, 256  ;;  %p3342_p4 = scmp.lt.s32.totalorder %s4001_s26, %s3340_s17 }
 0x74b   : > { %p3337_p2 = pnand %p3336_p1, %p3505_p5  ;;  %p3343_p7 = scmp.lt.s32.totalorder %s3341_s20, %s3335_s30 }
 0x74d   : > { %p3338_p3 = pneg %p3337_p2  ;;  %p3344_p8 = por %p3343_p7, %p3342_p4 }
 0x74f   : > { %p3345_p9 = pnand %p3344_p8, %p3338_p3 }
 0x7bf   : > { %v2547_v5 = vpop.xlane.xlu1 %2546 }
 0x7c0   : > { %v2548_v6 = vmul.f32 0.03125, %v2547_v5 }
 0x7c2   : > { %v2554_v8 = vmul.f32 %v2548_v6, %v2548_v6  ;;  %v2556_v11 = vsub.f32 %v2544_v0, %v2548_v6 }
 0x7c3   : > { %v2552_v7 = vpop.xlane.xlu1 %2551 }
 0x7c4   : > { %v2553_v9 = vmul.f32 0.03125, %v2552_v7 }
 0x7c6   : > { %v2555_v10 = vsub.f32 %v2553_v9, %v2554_v8 }
 0x7c8   : > { %v2557_v12 = vadd.f32 1e-05, %v2555_v10 }
 0x7ca   : > { %3305 = vrsqrt.f32 %v2557_v12 }
 0x7d4   : > { %v3306_v13 = vpop.eup %3305 }
 0x7d5   : > { %v2559_v15 = vmul.f32 %v3306_v13, %v2556_v11 }
 0x7d7   : > { %v2564_v17 = vmul.f32 %v2817_v14, %v2559_v15 }
 0x7d9   : > { %v2569_v19 = vadd.f32 %v2818_v16, %v2564_v17 }
 0x7db   : > { %v2570_v20 = vmul.f32 %v2569_v19, %v3933_v49 }
 0x7dd   : > { %2571 = vst.msk [vmem:[%s380_s11] sm:$0xff] %vm453_vm1, %v2570_v20 }
 0x7de   : > { %3348 = shalt.err (!%p3345_p9)
}
 0x7df   : > { %s3349_s27 = scalar_lea.hbm %s3999_s2, 128  ;;  %s3353_s29 = scalar_lea.hbm %s4052_s9, 256 }
 0x7e0   : > { %p3350_p10 = scmp.ne.s32.totalorder %s3999_s2, %s3349_s27  ;;  %p3354_p13 = scmp.lt.u32.totalorder %s3999_s2, %s4052_s9 }
 0x7e1   : > { %p3355_p0 = scmp.lt.u32.totalorder %s3353_s29, %s3349_s27  ;;  %p3357_p2 = scmp.lt.u32.totalorder %s3349_s27, %s3999_s2 }
 0x7e2   : > { %p3351_p11 = pnand %p3350_p10, %p3505_p5 }
 0x7e3   : > { %p3356_p1 = por %p3355_p0, %p3354_p13 }
 0x7e4   : > { %p3352_p12 = pneg %p3351_p11 }
 0x7e5   : > { %p3358_p3 = por %p3357_p2, %p3356_p1 }
 0x7e7   : > { %p3359_p4 = pnand %p3358_p3, %p3352_p12 }
 0x7e9   : > { %3362 = shalt.err (!%p3359_p4)
}
 0x7ea   : > { %3235 = dma.vmem_to_hbm [thread:$0]  (%p3505_p5), %s4001_s26, 128, %s3999_s2, %s2573_s12  }
 0x7eb PF: > { %p3246_p7 = scmp.ge.s32.totalorder %s3401_s16, 2  ;;  %s2618_s28 = sand.u32 1, %s3389_s13  }
 0x7ec   : > { %s2619_s3 = scalar_lea.sflag [#allocation3], %s2618_s28 }
 0x7ed   : > { %p3240_p8 = pnand %p3246_p7, %p3509_p6 }
 0x7ef   : > { %3380 = dma.done.wait (!%p3240_p8), %s2619_s3, 128  }
 0x7f0   : > { %3382 = vsyncadd (!%p3240_p8), %s2619_s3, 4294967168  ;;  %s2628_s30 = scalar_lea.sflag [#allocation5], %s2618_s28 }
 0x7f1   : > { %3384 = dma.done.wait (!%p3240_p8), %s2628_s30, 512  }
 0x7f2   : > { %3386 = vsyncadd (!%p3240_p8), %s2628_s30, 4294966784  ;;  %p24_p5 = scmp.ge.s32.totalorder %s3492_s19, 4   ;;  %s4062_s13 = smov %s3393_s14 }
 0x7f3   : > { %s4063_s14 = smov %s3397_s15  ;;  %s4064_s15 = smov %s3503_s22 }
 0x7f4   : > { %s4065_s16 = smov %s3492_s19  ;;  %26 = sbr.rel (!%p24_p5) target bundleno = 9 (0x9), region = 118 }
 0x7fb   :  { %2633 = vsyncpa [#allocation3], 1 }
 0x7fc   :  { %2635 = vsyncpa [#allocation3 + $0x1], 1 }
 0x7fd   :  { %2636 = vsyncpa [#allocation5], 1 }
 0x7fe   :  { %2638 = vsyncpa [#allocation5 + $0x1], 1 }

</bundles_post_ra>
